<compile_context>
chip_gen: v7x
topology: tpu7x:2x2x1
jax: 0.10.0
libtpu: 0.0.40
codegen_flags: <defaults>
</compile_context>

<pallas_src>
import functools

import jax
import jax.numpy as jnp
from jax.experimental import pallas as pl
from jax.experimental.pallas import tpu as pltpu


def _round_up(x, m):
    return (x + m - 1) // m * m


def _chip_generation():
    """Best-effort TPU generation from device_kind; 0 if unknown."""
    try:
        kind = jax.devices()[0].device_kind.lower()
    except Exception:
        return 0
    for g in (7, 6, 5, 4):
        if f"v{g}" in kind:
            return g
    return 0


def _vmem_capacity_bytes():
    """Physical per-core VMEM; conservative 64 MiB fallback."""
    try:
        info = pltpu.get_tpu_info()
        cap = getattr(info, "vmem_capacity_bytes", None)
        if cap:
            return int(cap)
    except Exception:
        pass
    return 64 << 20


def _n_split(d):
    # Two lane-aligned sub-chunks let dot2 of one chunk overlap ReLU of the other.
    return 2 if (d >= 256 and d % 256 == 0) else 1


def _clamp_vmem(need, budget):
    return int(min(max(need, 32 << 20), max(budget, 32 << 20)))


def _balance_tiles(M8, tm, gen):
    """On v7x (2 TCs), prefer an even number of M tiles for balanced sharding."""
    tm = max(8, tm // 8 * 8)
    if gen >= 7 and M8 > tm:
        n = -(-M8 // tm)
        if n % 2 == 1:
            tm2 = _round_up(-(-M8 // (n + 1)), 8)
            if tm2 >= 128 and (-(-M8 // tm2)) % 2 == 0:
                tm = tm2
    return tm


def _select_tiles(M, C_pad, H_pad, out_itemsize, gen, budget):
    """Pick (tm, th, resident, n_split, vmem_limit) under the VMEM budget."""
    M8 = _round_up(max(M, 1), 8)
    headroom = 4 << 20
    tm_cap = 512 if gen >= 7 else 1024

    # ---- weights-resident fast path ----------------------------------------
    # Weights get a constant index_map (DMA'd once, stay resident); budget them
    # at 2 buffers each since the pipeline still allocates double buffers.
    w_bytes = 2 * 2 * C_pad * H_pad * 2
    bias_bytes = 2 * (H_pad + C_pad) * 4
    fixed = w_bytes + bias_bytes + headroom
    per_row = (2 * C_pad * 2                 # x tile (bf16, double-buffered)
               + 2 * C_pad * out_itemsize    # out tile (double-buffered)
               + C_pad * 4                   # local f32 accumulator
               + H_pad * 6)                  # hidden intermediate (f32 + bf16)
    min_rows = min(128, M8)
    if fixed + min_rows * per_row <= budget:
        tm = min(tm_cap, M8, (budget - fixed) // per_row)
        tm = _balance_tiles(M8, tm, gen)
        need = fixed + tm * per_row
        return tm, H_pad, True, _n_split(H_pad), _clamp_vmem(need, budget)

    # ---- streaming fallback: H is a trailing reduction axis -----------------
    # th must be a multiple of 128 that divides H_pad exactly (lane-dense tiles).
    k = H_pad // 128
    th_opts = sorted({g * 128 for g in range(1, k + 1) if k % g == 0},
                     reverse=True)

    def need(tm, th):
        return (2 * tm * C_pad * 2           # x tile (bf16, db)
                + 2 * 2 * C_pad * th * 2     # W1 + W2 chunks (bf16, db)
                + 2 * (th + C_pad) * 4       # b1 chunk + b2 (f32, db)
                + 2 * tm * C_pad * out_itemsize
                + tm * C_pad * 4             # f32 accumulator scratch
                + tm * th * 6                # hidden intermediate (f32 + bf16)
                + headroom)

    tm = max(8, min(tm_cap, M8) // 8 * 8)
    th = None
    while True:
        th = next((t for t in th_opts if need(tm, t) <= budget), None)
        if th is not None or tm <= 8:
            break
        tm = max(8, (tm // 2) // 8 * 8)
    if th is None:
        th = 128
    tm = _balance_tiles(M8, tm, gen)
    return tm, th, False, _n_split(th), _clamp_vmem(need(tm, th), budget)


# ---------------------------------------------------------------------------
# Kernels
# ---------------------------------------------------------------------------

def _ffn_kernel_resident(x_ref, w1_ref, b1_ref, w2_ref, b2_ref, o_ref,
                         *, n_split, ew_bf16):
    # x: (tm, Cp) bf16; W1: (Cp, Hp) bf16; b1: (1, Hp) f32;
    # W2: (Hp, Cp) bf16; b2: (1, Cp) f32; o: (tm, Cp).
    x = x_ref[...]
    hp = w1_ref.shape[1]
    cs = hp // n_split
    # Fold b2 into the accumulator init (saves one (tm, Cp) pass at the end).
    acc = jnp.broadcast_to(b2_ref[...], o_ref.shape).astype(jnp.float32)
    for s in range(n_split):             # static unroll: MXU/VPU overlap
        lo, hi = s * cs, (s + 1) * cs
        h = jnp.dot(x, w1_ref[:, lo:hi], preferred_element_type=jnp.float32)
        if ew_bf16:
            hb = jnp.maximum(h.astype(jnp.bfloat16)
                             + b1_ref[:, lo:hi].astype(jnp.bfloat16), 0)
        else:
            hb = jnp.maximum(h + b1_ref[:, lo:hi], 0.0).astype(jnp.bfloat16)
        acc = acc + jnp.dot(hb, w2_ref[lo:hi, :],
                            preferred_element_type=jnp.float32)
    o_ref[...] = acc.astype(o_ref.dtype)


def _ffn_kernel_stream(x_ref, w1_ref, b1_ref, w2_ref, b2_ref, o_ref, acc_ref,
                       *, n_split, ew_bf16):
    # Same as above but H streams in (Cp, th)/(th, Cp) chunks over grid axis 1,
    # accumulating in an f32 VMEM scratch.
    h_idx = pl.program_id(1)

    @pl.when(h_idx == 0)
    def _init():
        acc_ref[...] = jnp.broadcast_to(b2_ref[...],
                                        acc_ref.shape).astype(jnp.float32)

    x = x_ref[...]
    th = w1_ref.shape[1]
    cs = th // n_split
    acc = acc_ref[...]
    for s in range(n_split):
        lo, hi = s * cs, (s + 1) * cs
        h = jnp.dot(x, w1_ref[:, lo:hi], preferred_element_type=jnp.float32)
        if ew_bf16:
            hb = jnp.maximum(h.astype(jnp.bfloat16)
                             + b1_ref[:, lo:hi].astype(jnp.bfloat16), 0)
        else:
            hb = jnp.maximum(h + b1_ref[:, lo:hi], 0.0).astype(jnp.bfloat16)
        acc = acc + jnp.dot(hb, w2_ref[lo:hi, :],
                            preferred_element_type=jnp.float32)
    acc_ref[...] = acc

    @pl.when(h_idx == pl.num_programs(1) - 1)
    def _finalize():
        o_ref[...] = acc_ref[...].astype(o_ref.dtype)


# ---------------------------------------------------------------------------
# Wrappers
# ---------------------------------------------------------------------------

def prepare_ffn_params(w1, b1, w2, b2):
    """Cast weights to bf16 and lane-pad once, outside the per-call path."""
    C, H = w1.shape
    C_pad = _round_up(C, 128)
    H_pad = _round_up(H, 128)
    w1p = jnp.pad(w1.astype(jnp.bfloat16), ((0, C_pad - C), (0, H_pad - H)))
    w2p = jnp.pad(w2.astype(jnp.bfloat16), ((0, H_pad - H), (0, C_pad - C)))
    b1p = jnp.pad(b1.astype(jnp.float32).reshape(1, H), ((0, 0), (0, H_pad - H)))
    b2p = jnp.pad(b2.astype(jnp.float32).reshape(1, C), ((0, 0), (0, C_pad - C)))
    return {"w1": w1p, "b1": b1p, "w2": w2p, "b2": b2p, "C": C, "H": H}


@functools.partial(
    jax.jit,
    static_argnames=("tm", "th", "resident", "n_split", "ew_bf16", "vmem_limit"))
def _ffn_call(x2, w1p, b1p, w2p, b2p, *, tm, th, resident, n_split, ew_bf16,
              vmem_limit):
    M, C = x2.shape
    C_pad, H_pad = w1p.shape
    out_dtype = x2.dtype
    out_itemsize = jnp.dtype(out_dtype).itemsize

    M_pad = _round_up(M, tm)
    xb = jnp.pad(x2.astype(jnp.bfloat16), ((0, M_pad - M), (0, C_pad - C)))

    cost = pl.CostEstimate(
        flops=4 * M_pad * C_pad * H_pad,          # two matmuls, 2*M*C*H each
        transcendentals=0,
        bytes_accessed=(xb.size * 2 + w1p.size * 2 + w2p.size * 2
                        + b1p.size * 4 + b2p.size * 4
                        + M_pad * C_pad * out_itemsize),
    )
    comp = pltpu.CompilerParams(
        dimension_semantics=("parallel",) if resident
        else ("parallel", "arbitrary"),
        vmem_limit_bytes=int(vmem_limit),
    )

    if resident:
        kern = functools.partial(_ffn_kernel_resident,
                                 n_split=n_split, ew_bf16=ew_bf16)
        grid_spec = pltpu.PrefetchScalarGridSpec(
            num_scalar_prefetch=0,
            grid=(M_pad // tm,),
            in_specs=[
                pl.BlockSpec((tm, C_pad), lambda i: (i, 0)),        # x rows
                pl.BlockSpec((C_pad, H_pad), lambda i: (0, 0)),     # W1 (resident)
                pl.BlockSpec((1, H_pad), lambda i: (0, 0)),         # b1
                pl.BlockSpec((H_pad, C_pad), lambda i: (0, 0)),     # W2 (resident)
                pl.BlockSpec((1, C_pad), lambda i: (0, 0)),         # b2
            ],
            out_specs=pl.BlockSpec((tm, C_pad), lambda i: (i, 0)),
        )
    else:
        kern = functools.partial(_ffn_kernel_stream,
                                 n_split=n_split, ew_bf16=ew_bf16)
        grid_spec = pltpu.PrefetchScalarGridSpec(
            num_scalar_prefetch=0,
            grid=(M_pad // tm, H_pad // th),
            in_specs=[
                pl.BlockSpec((tm, C_pad), lambda i, h: (i, 0)),     # x rows
                pl.BlockSpec((C_pad, th), lambda i, h: (0, h)),     # W1 chunk
                pl.BlockSpec((1, th), lambda i, h: (0, h)),         # b1 chunk
                pl.BlockSpec((th, C_pad), lambda i, h: (h, 0)),     # W2 chunk
                pl.BlockSpec((1, C_pad), lambda i, h: (0, 0)),      # b2
            ],
            out_specs=pl.BlockSpec((tm, C_pad), lambda i, h: (i, 0)),
            scratch_shapes=[pltpu.VMEM((tm, C_pad), jnp.float32)],
        )

    out = pl.pallas_call(
        kern,
        out_shape=jax.ShapeDtypeStruct((M_pad, C_pad), out_dtype),
        grid_spec=grid_spec,
        compiler_params=comp,
        cost_estimate=cost,
    )(xb, w1p, b1p, w2p, b2p)

    return out[:M, :C]


def feed_forward(x, params):
    """x: (B, T, C) -> (B, T, C). `params` from prepare_ffn_params (done once)."""
    B, T, C = x.shape
    assert C == params["C"], "embedding dim mismatch"
    M = B * T
    C_pad, H_pad = params["w1"].shape
    out_itemsize = jnp.dtype(x.dtype).itemsize

    gen = _chip_generation()
    budget = int(_vmem_capacity_bytes()) * 3 // 4   # ~96 MiB v5e/v6e, ~48 MiB v7x
    tm, th, resident, n_split, vmem_limit = _select_tiles(
        M, C_pad, H_pad, out_itemsize, gen, budget)
    ew_bf16 = gen >= 6    # bf16 VALU on v6e/v7x; f32 elementwise on v5e/unknown

    out = _ffn_call(x.reshape(M, C), params["w1"], params["b1"],
                    params["w2"], params["b2"],
                    tm=tm, th=th, resident=resident, n_split=n_split,
                    ew_bf16=ew_bf16, vmem_limit=vmem_limit)
    return out.reshape(B, T, C)


def _reference(x, w1, b1, w2, b2):
    h = jnp.maximum(x @ w1 + b1, 0.0)
    return h @ w2 + b2


if __name__ == "__main__":
    # Small shapes consistent with the module: batch=2, seq=8, n_embd=32.
    B, T, n_embd = 2, 8, 32
    hidden = 4 * n_embd  # 128

    key = jax.random.PRNGKey(0)
    kx, k1, k2, k3, k4 = jax.random.split(key, 5)

    x = jax.random.normal(kx, (B, T, n_embd), dtype=jnp.float32)

    # PyTorch-style uniform(-1/sqrt(fan_in), 1/sqrt(fan_in)) init, deterministic.
    lim1 = 1.0 / (n_embd ** 0.5)
    lim2 = 1.0 / (hidden ** 0.5)
    w1 = jax.random.uniform(k1, (n_embd, hidden), jnp.float32, -lim1, lim1)
    b1 = jax.random.uniform(k2, (hidden,), jnp.float32, -lim1, lim1)
    w2 = jax.random.uniform(k3, (hidden, n_embd), jnp.float32, -lim2, lim2)
    b2 = jax.random.uniform(k4, (n_embd,), jnp.float32, -lim2, lim2)

    # Weight cast/pad hoisted out of the per-call path (done once here).
    params = prepare_ffn_params(w1, b1, w2, b2)

    y = feed_forward(x, params)
    y = jax.block_until_ready(y)

    y_ref = _reference(x.reshape(-1, n_embd), w1, b1, w2, b2).reshape(B, T, n_embd)
    assert y.shape == (B, T, n_embd)
    # bf16 MXU inputs (f32 accumulate) -> widened tolerance vs f32 reference.
    assert jnp.allclose(y, y_ref, atol=5e-2, rtol=5e-2), "mismatch vs reference"

    print("KERNEL_OK")
</pallas_src>

<mosaic_0001>
module attributes {stable_mosaic.version = 11 : i64} {
  func.func @_ffn_kernel_resident(%arg0: i32, %arg1: memref<16x128xbf16, #tpu.memory_space<vmem>>, %arg2: memref<128x128xbf16, #tpu.memory_space<vmem>>, %arg3: memref<1x128xf32, #tpu.memory_space<vmem>>, %arg4: memref<128x128xbf16, #tpu.memory_space<vmem>>, %arg5: memref<1x128xf32, #tpu.memory_space<vmem>>, %arg6: memref<16x128xf32, #tpu.memory_space<vmem>>) attributes {dimension_semantics = [#tpu.dimension_semantics<parallel>], iteration_bounds = array<i64: 1>, scalar_prefetch = 0 : i64, scratch_operands = 0 : i64, tpu.core_type = #tpu.core_type<tc>, window_params = [{transform_indices = @transform_0, window_bounds = array<i64: 16, 128>}, {pipeline_mode = #tpu.pipeline_mode<synchronous>, transform_indices = @transform_1, window_bounds = array<i64: 128, 128>}, {pipeline_mode = #tpu.pipeline_mode<synchronous>, transform_indices = @transform_2, window_bounds = array<i64: 1, 128>}, {pipeline_mode = #tpu.pipeline_mode<synchronous>, transform_indices = @transform_3, window_bounds = array<i64: 128, 128>}, {pipeline_mode = #tpu.pipeline_mode<synchronous>, transform_indices = @transform_4, window_bounds = array<i64: 1, 128>}, {transform_indices = @transform_5, window_bounds = array<i64: 16, 128>}]} {
    %c0 = arith.constant 0 : index
    %c0_0 = arith.constant 0 : index
    %0 = vector.load %arg1[%c0, %c0_0] : memref<16x128xbf16, #tpu.memory_space<vmem>>, vector<16x128xbf16>
    %c0_1 = arith.constant 0 : index
    %c0_2 = arith.constant 0 : index
    %1 = vector.load %arg5[%c0_1, %c0_2] : memref<1x128xf32, #tpu.memory_space<vmem>>, vector<1x128xf32>
    %2 = vector.shape_cast %1 : vector<1x128xf32> to vector<1x128xf32>
    %3 = vector.broadcast %2 : vector<1x128xf32> to vector<16x128xf32>
    %c0_3 = arith.constant 0 : index
    %c0_4 = arith.constant 0 : index
    %4 = vector.load %arg2[%c0_3, %c0_4] : memref<128x128xbf16, #tpu.memory_space<vmem>>, vector<128x128xbf16>
    %cst = arith.constant dense<0.000000e+00> : vector<16x128xf32>
    %5 = tpu.matmul %0, %4, %cst {dimension_numbers = #tpu.dot_dimension_numbers<[1], [0], [0], [1], [0, 0, 1, 1], [], []>} : vector<16x128xbf16>, vector<128x128xbf16>, vector<16x128xf32> -> vector<16x128xf32>
    %c0_5 = arith.constant 0 : index
    %c0_6 = arith.constant 0 : index
    %6 = vector.load %arg3[%c0_5, %c0_6] : memref<1x128xf32, #tpu.memory_space<vmem>>, vector<1x128xf32>
    %7 = vector.broadcast %6 : vector<1x128xf32> to vector<16x128xf32>
    %8 = arith.addf %5, %7 : vector<16x128xf32>
    %cst_7 = arith.constant 0.000000e+00 : f32
    %9 = vector.broadcast %cst_7 : f32 to vector<16x128xf32>
    %10 = arith.maximumf %8, %9 : vector<16x128xf32>
    %11 = arith.truncf %10 : vector<16x128xf32> to vector<16x128xbf16>
    %c0_8 = arith.constant 0 : index
    %c0_9 = arith.constant 0 : index
    %12 = vector.load %arg4[%c0_8, %c0_9] : memref<128x128xbf16, #tpu.memory_space<vmem>>, vector<128x128xbf16>
    %cst_10 = arith.constant dense<0.000000e+00> : vector<16x128xf32>
    %13 = tpu.matmul %11, %12, %cst_10 {dimension_numbers = #tpu.dot_dimension_numbers<[1], [0], [0], [1], [0, 0, 1, 1], [], []>} : vector<16x128xbf16>, vector<128x128xbf16>, vector<16x128xf32> -> vector<16x128xf32>
    %14 = arith.addf %3, %13 : vector<16x128xf32>
    %c0_11 = arith.constant 0 : index
    %c0_12 = arith.constant 0 : index
    %15 = vector.load %arg6[%c0_11, %c0_12] : memref<16x128xf32, #tpu.memory_space<vmem>>, vector<16x128xf32>
    tpu.vector_store %arg6[%c0_11, %c0_12], %14 {strides = array<i32>} : memref<16x128xf32, #tpu.memory_space<vmem>>, vector<16x128xf32>,
    return
  }
  func.func @transform_0(%arg0: i32) -> (i32, i32) {
    %c0_i32 = arith.constant 0 : i32
    %c0_i32_0 = arith.constant 0 : i32
    return %arg0, %c0_i32 : i32, i32
  }
  func.func @transform_1(%arg0: i32) -> (i32, i32) {
    %c0_i32 = arith.constant 0 : i32
    %c0_i32_0 = arith.constant 0 : i32
    %c0_i32_1 = arith.constant 0 : i32
    return %c0_i32, %c0_i32_0 : i32, i32
  }
  func.func @transform_2(%arg0: i32) -> (i32, i32) {
    %c0_i32 = arith.constant 0 : i32
    %c0_i32_0 = arith.constant 0 : i32
    %c0_i32_1 = arith.constant 0 : i32
    return %c0_i32, %c0_i32_0 : i32, i32
  }
  func.func @transform_3(%arg0: i32) -> (i32, i32) {
    %c0_i32 = arith.constant 0 : i32
    %c0_i32_0 = arith.constant 0 : i32
    %c0_i32_1 = arith.constant 0 : i32
    return %c0_i32, %c0_i32_0 : i32, i32
  }
  func.func @transform_4(%arg0: i32) -> (i32, i32) {
    %c0_i32 = arith.constant 0 : i32
    %c0_i32_0 = arith.constant 0 : i32
    %c0_i32_1 = arith.constant 0 : i32
    return %c0_i32, %c0_i32_0 : i32, i32
  }
  func.func @transform_5(%arg0: i32) -> (i32, i32) {
    %c0_i32 = arith.constant 0 : i32
    %c0_i32_0 = arith.constant 0 : i32
    return %arg0, %c0_i32 : i32, i32
  }
}

</mosaic_0001>

<bundles_post_ra>
// kernel: _ffn_call.1
= control target key start
LH: loop header
LB: loop body
LE: loop exit
PB: predicated region body
PF: predicated region fallthrough
CT: control target
= control target key end

     0   :  { %10 = vsyncpa [#allocation3], 0  ;;  %s566_s0 = inlined_call_operand.vmem [shape: bf16[16,128], index: 0, kind: input, shape index: {}]   ;;  %s567_s1 = inlined_call_operand.hbm [shape: bf16[128,128], index: 1, kind: input, shape index: {}]   ;;  %s568_s2 = inlined_call_operand.vmem [shape: f32[1,128], index: 2, kind: input, shape index: {}]   ;;  %s569_s3 = inlined_call_operand.hbm [shape: bf16[128,128], index: 3, kind: input, shape index: {}]   ;;  %s570_s4 = inlined_call_operand.vmem [shape: f32[1,128], index: 4, kind: input, shape index: {}]   ;;  %s571_s5 = inlined_call_operand.hbm [shape: f32[16,128], index: 5, kind: output, shape index: {}]  }
   0x1   :  { %11 = vsyncpa [#allocation6], 0 }
   0x2   :  { %12 = vsyncpa [#allocation4], 0  ;;  %s482_s18 = smov [#allocation2]   ;;  %s410_s22 = scalar_lea.hbm %s567_s1, 1024 }
   0x3   :  { %s20_s19 = sshll.u32 %s482_s18, 4  ;;  %p411_p0 = scmp.ne.s32.totalorder %s567_s1, %s410_s22  ;;  %s21_s19 = int_to_ptr.vmem [resolvable:$true] %s20_s19 }
   0x4   :  { %p414_p1 = scmp.lt.u32.totalorder %s410_s22, %s567_s1 }
   0x6   :  { %p416_p2 = pnand %p414_p1, %p411_p0 }
   0x8   :  { %419 = shalt.err (!%p416_p2)
}
   0x9   :  { %s420_s27 = scalar_lea.vmem %s21_s19, 1024  ;;  %p425_p4 = scmp.lt.s32.totalorder %s21_s19, %s21_s19 }
   0xa   :  { %p421_p3 = scmp.ne.s32.totalorder %s21_s19, %s420_s27  ;;  %p426_p5 = scmp.lt.s32.totalorder %s420_s27, %s420_s27 }
   0xc   :  { %p427_p6 = por %p426_p5, %p425_p4 }
   0xe   :  { %p428_p7 = pnand %p427_p6, %p421_p3 }
  0x10   :  { %431 = shalt.err (!%p428_p7)
}
  0x11   :  { %s483_s28 = smov 64   ;;  %s484_s29 = smov 4  }
  0x12   :  { %26 = dma.hbm_to_vmem [thread:$0]  %s567_s1, 1024, %s21_s19, [#allocation3], %s483_s28, %s483_s28, %s484_s29  }
  0x13   :  { %s485_s7 = smov [#allocation5]   ;;  %s432_s11 = scalar_lea.hbm %s569_s3, 1024 }
  0x14   :  { %s34_s8 = sshll.u32 %s485_s7, 4  ;;  %p433_p8 = scmp.ne.s32.totalorder %s569_s3, %s432_s11  ;;  %s35_s8 = int_to_ptr.vmem [resolvable:$true] %s34_s8 }
  0x15   :  { %p436_p9 = scmp.lt.u32.totalorder %s432_s11, %s569_s3 }
  0x17   :  { %p438_p10 = pnand %p436_p9, %p433_p8 }
  0x19   :  { %441 = shalt.err (!%p438_p10)
}
  0x1a   :  { %s442_s16 = scalar_lea.vmem %s35_s8, 1024  ;;  %p447_p12 = scmp.lt.s32.totalorder %s35_s8, %s35_s8 }
  0x1b   :  { %p443_p11 = scmp.ne.s32.totalorder %s35_s8, %s442_s16  ;;  %p448_p13 = scmp.lt.s32.totalorder %s442_s16, %s442_s16 }
  0x1d   :  { %p449_p0 = por %p448_p13, %p447_p12 }
  0x1f   :  { %p450_p1 = pnand %p449_p0, %p443_p11 }
  0x21   :  { %453 = shalt.err (!%p450_p1)
}
  0x22   :  { %40 = dma.hbm_to_vmem [thread:$0]  %s569_s3, 1024, %s35_s8, [#allocation6], %s483_s28, %s483_s28, %s484_s29  }
  0x23   :  { %476 = dma.done.wait [#allocation3], 1024  }
  0x24   :  { %477 = vsyncadd [#allocation3], 4294966272 }
  0x25   :  { %478 = dma.done.wait [#allocation6], 1024  }
  0x26   :  { %479 = vsyncadd [#allocation6], 4294966272  ;;  %v486_v0 = vmov 0.0   ;;  %vm487_vm0 = vmmov 0   ;;  %v393_v1 = vld [vmem:[#allocation2] sm:$0xff]   ;;  %v394_v2 = vld [vmem:[#allocation2 + $0x8] sm:$0xff]  }
  0x27   :  { %344 = vmatprep.subr.bf16.mxu0 %v486_v0  ;;  %360 = vmatprep.mubr.msk.bf16.mxu0 %vm487_vm0, %v486_v0  ;;  %v395_v3 = vld [vmem:[#allocation2 + $0x10] sm:$0xff]   ;;  %v402_v4 = vld [vmem:[#allocation5] sm:$0xff]   ;;  %v396_v5 = vld [vmem:[#allocation2 + $0x18] sm:$0xff]   ;;  %s488_s22 = smov [#allocation7]  }
  0x28   :  { %364 = vmatprep.subr.bf16.mxu1 %v486_v0  ;;  %380 = vmatprep.mubr.msk.bf16.mxu1 %vm487_vm0, %v486_v0  ;;  %v403_v6 = vld [vmem:[#allocation5 + $0x8] sm:$0xff]   ;;  %v397_v7 = vld [vmem:[#allocation2 + $0x20] sm:$0xff]   ;;  %v404_v8 = vld [vmem:[#allocation5 + $0x10] sm:$0xff]   ;;  %s294_s23 = sshll.u32 %s488_s22, 4  ;;  %s295_s23 = int_to_ptr.vmem [resolvable:$true] %s294_s23 }
  0x29   :  { %345 = vmatpush3.bf16.msra.mxu0 %v393_v1  ;;  %365 = vmatpush3.bf16.msra.mxu1 %v402_v4  ;;  %v398_v9 = vld [vmem:[#allocation2 + $0x28] sm:$0xff]   ;;  %v405_v10 = vld [vmem:[#allocation5 + $0x18] sm:$0xff]   ;;  %v399_v11 = vld [vmem:[#allocation2 + $0x30] sm:$0xff]   ;;  %p459_p3 = scmp.lt.s32.totalorder %s295_s23, %s295_s23 }
  0x2a   :  { %346 = vmatprep.subr.bf16.mxu0 %v486_v0  ;;  %366 = vmatprep.subr.bf16.mxu1 %v486_v0  ;;  %v406_v12 = vld [vmem:[#allocation5 + $0x20] sm:$0xff]   ;;  %v400_v13 = vld [vmem:[#allocation2 + $0x38] sm:$0xff]   ;;  %v407_v14 = vld [vmem:[#allocation5 + $0x28] sm:$0xff]  }
  0x2b   :  { %v401_v15 = vld [vmem:[%s566_s0] sm:$0xff]   ;;  %v409_v17 = vld [vmem:[#allocation5 + $0x38] sm:$0xff]  }
  0x2c   :  { %v408_v16 = vld [vmem:[#allocation5 + $0x30] sm:$0xff]  }
  0x2d   :  { %347 = vmatpush3.bf16.msra.mxu0 %v394_v2  ;;  %367 = vmatpush3.bf16.msra.mxu1 %v403_v6  ;;  %v308_v18 = vld [vmem:[%s568_s2] ss:$0 sm:$0xff]  ;;  %s454_s2 = scalar_lea.vmem %s295_s23, 256 }
  0x2e   :  { %348 = vmatprep.subr.bf16.mxu0 %v486_v0  ;;  %368 = vmatprep.subr.bf16.mxu1 %v486_v0  ;;  %v307_v28 = vld [vmem:[%s570_s4] ss:$0 sm:$0xff]  ;;  %p455_p2 = scmp.ne.s32.totalorder %s295_s23, %s454_s2  ;;  %p460_p4 = scmp.lt.s32.totalorder %s454_s2, %s454_s2 }
  0x30   :  { %p461_p5 = por %p460_p4, %p459_p3 }
  0x31   :  { %349 = vmatpush3.bf16.msra.mxu0 %v395_v3  ;;  %369 = vmatpush3.bf16.msra.mxu1 %v404_v8 }
  0x32   :  { %350 = vmatprep.subr.bf16.mxu0 %v486_v0  ;;  %370 = vmatprep.subr.bf16.mxu1 %v486_v0  ;;  %p462_p6 = pnand %p461_p5, %p455_p2 }
  0x35   :  { %351 = vmatpush3.bf16.msra.mxu0 %v396_v5  ;;  %371 = vmatpush3.bf16.msra.mxu1 %v405_v10 }
  0x36   :  { %352 = vmatprep.subr.bf16.mxu0 %v486_v0  ;;  %372 = vmatprep.subr.bf16.mxu1 %v486_v0 }
  0x39   :  { %353 = vmatpush3.bf16.msra.mxu0 %v397_v7  ;;  %373 = vmatpush3.bf16.msra.mxu1 %v406_v12 }
  0x3a   :  { %354 = vmatprep.subr.bf16.mxu0 %v486_v0  ;;  %374 = vmatprep.subr.bf16.mxu1 %v486_v0 }
  0x3d   :  { %355 = vmatpush3.bf16.msra.mxu0 %v398_v9  ;;  %375 = vmatpush3.bf16.msra.mxu1 %v407_v14 }
  0x3e   :  { %356 = vmatprep.subr.bf16.mxu0 %v486_v0  ;;  %376 = vmatprep.subr.bf16.mxu1 %v486_v0 }
  0x41   :  { %357 = vmatpush3.bf16.msra.mxu0 %v399_v11  ;;  %377 = vmatpush3.bf16.msra.mxu1 %v408_v16 }
  0x42   :  { %358 = vmatprep.subr.bf16.mxu0 %v486_v0  ;;  %378 = vmatprep.subr.bf16.mxu1 %v486_v0 }
  0x45   :  { %359 = vmatpush3.bf16.msra.mxu0 %v400_v13  ;;  %379 = vmatpush3.bf16.msra.mxu1 %v409_v17 }
  0x48   :  { %361 = vmatmul.mubr.bf16.vlgmr.msra.gmra.mrb[0].mxu0 %v401_v15 }
 0x11b   :  { %v170_v19 = vpop.f32.mrb[0].mxu0 }
 0x11c   :  { %v171_v20 = vadd.f32 %v308_v18, %v170_v19  ;;  %v362_v21 = vpop.f32.mrb[1].mxu0 }
 0x11d   :  { %v173_v22 = vpop.f32.mrb[2].mxu0 }
 0x11e   :  { %v174_v23 = vadd.f32 %v308_v18, %v173_v22  ;;  %v363_v24 = vpop.f32.mrb[3].mxu0  ;;  %v177_v25 = vmax.f32 %v171_v20, 0.0 }
 0x120   :  { %v178_v26 = vmax.f32 %v174_v23, 0.0 }
 0x122   :  { %v179_v27 = vpack.c.bf16 %v178_v26, %v177_v25 }
 0x124   :  { %381 = vmatmul.mubr.bf16.vlgmr.msra.gmra.mrb[0].mxu1 %v179_v27 }
 0x1f7   :  { %v278_v29 = vpop.f32.mrb[0].mxu1 }
 0x1f8   :  { %v285_v30 = vadd.f32 %v307_v28, %v278_v29  ;;  %v382_v31 = vpop.f32.mrb[1].mxu1 }
 0x1f9   :  { %v281_v32 = vpop.f32.mrb[2].mxu1 }
 0x1fa   :  { %287 = vst [vmem:[#allocation7] sm:$0xff] %v285_v30  ;;  %v286_v33 = vadd.f32 %v307_v28, %v281_v32  ;;  %v383_v34 = vpop.f32.mrb[3].mxu1 }
 0x1fc   :  { %288 = vst [vmem:[#allocation7 + $0x8] sm:$0xff] %v286_v33 }
 0x1fd   :  { %465 = shalt.err (!%p462_p6)
}
 0x1fe   :  { %s466_s25 = scalar_lea.hbm %s571_s5, 256 }
 0x1ff   :  { %p467_p7 = scmp.ne.s32.totalorder %s571_s5, %s466_s25  ;;  %p470_p8 = scmp.lt.u32.totalorder %s466_s25, %s571_s5 }
 0x201   :  { %p472_p9 = pnand %p470_p8, %p467_p7 }
 0x203   :  { %475 = shalt.err (!%p472_p9)
}
 0x204   :  { %s489_s30 = smov 128   ;;  %s490_s6 = smov 8  }
 0x205   :  { %300 = dma.vmem_to_hbm [thread:$0]  %s295_s23, 256, %s571_s5, [#allocation4], %s489_s30, %s489_s30, %s490_s6  }
 0x206   :  { %480 = dma.done.wait [#allocation4], 256  }
 0x207   :  { %481 = vsyncadd [#allocation4], 4294967040 }
 0x208   :  { %304 = vsyncpa [#allocation3], 1 }
 0x209   :  { %305 = vsyncpa [#allocation6], 1 }
 0x20a   :  { %306 = vsyncpa [#allocation4], 1 }

</bundles_post_ra>
